<compile_context>
chip_gen: v6e
topology: v6e:2x2x1
jax: 0.10.0
libtpu: 0.0.40
codegen_flags: <defaults>
</compile_context>

<pallas_src>
import jax
import jax.numpy as jnp
from jax.experimental import pallas as pl
from jax.experimental.pallas import tpu as pltpu

IN_FEATS = 405
H1 = 256
H2 = 128
HEAD = 256                  # fused fc_value(128) || fc_advantage(128)
OUT_PAD = 128               # lane-dense output slab; q lives in lanes 0..4
N_ACT = 5
TB_MAX = 512                # max batch-tile rows


def qnet_kernel(x_ref,
                w1_ref, b1_ref,
                w2_ref, b2_ref,
                wh_ref, bh_ref,
                wq_ref, bq_ref,
                q_ref):
    # in-kernel cast to bf16 (no wrapper pad/cast pass); K = 405 contraction
    xb = x_ref[...].astype(jnp.bfloat16)

    # fc1 + relu : [TB,405](bf16) @ [405,256](bf16) -> f32
    h = jnp.dot(xb, w1_ref[...], preferred_element_type=jnp.float32)
    h = jnp.maximum(h + b1_ref[...], 0.0).astype(jnp.bfloat16)

    # fc2 + relu : [TB,256] @ [256,128]
    h = jnp.dot(h, w2_ref[...], preferred_element_type=jnp.float32)
    h = jnp.maximum(h + b2_ref[...], 0.0).astype(jnp.bfloat16)

    # fused head hidden layer (fc_value || fc_advantage) + relu : [TB,128] @ [128,256]
    h = jnp.dot(h, wh_ref[...], preferred_element_type=jnp.float32)
    h = jnp.maximum(h + bh_ref[...], 0.0).astype(jnp.bfloat16)

    # fused value/advantage projection; dueling combine folded into weights:
    # q_j = v + a_j - mean_k(a_k) for lanes j<5, zeros elsewhere.
    q = jnp.dot(h, wq_ref[...], preferred_element_type=jnp.float32) + bq_ref[...]
    q_ref[...] = q.astype(q_ref.dtype)     # lane-dense [TB,128] bf16 store


def init_linear(key, fan_in, fan_out):
    """Deterministic init mimicking torch nn.Linear default (U(+-1/sqrt(fan_in))).

    Weight is [fan_in, fan_out] (transposed vs torch), bias is [1, fan_out]."""
    kw, kb = jax.random.split(key)
    bound = 1.0 / jnp.sqrt(jnp.float32(fan_in))
    w = jax.random.uniform(kw, (fan_in, fan_out), jnp.float32, -bound, bound)
    b = jax.random.uniform(kb, (1, fan_out), jnp.float32, -bound, bound)
    return w, b


def init_qnet_params(key):
    keys = jax.random.split(key, 6)
    w1, b1 = init_linear(keys[0], IN_FEATS, H1)   # fc1
    w2, b2 = init_linear(keys[1], H1, H2)         # fc2
    wv1, bv1 = init_linear(keys[2], H2, 128)      # fc_value
    wv2, bv2 = init_linear(keys[3], 128, 1)       # value
    wa1, ba1 = init_linear(keys[4], H2, 128)      # fc_advantage
    wa2, ba2 = init_linear(keys[5], 128, N_ACT)   # advantage
    return dict(w1=w1, b1=b1, w2=w2, b2=b2,
                wv1=wv1, bv1=bv1, wv2=wv2, bv2=bv2,
                wa1=wa1, ba1=ba1, wa2=wa2, ba2=ba2)


def pack_qnet_params(p):
    """One-time weight packing: fuse heads / fold dueling combine / cast bf16."""
    # fused head hidden layer: [128, 256] = fc_value || fc_advantage
    wh = jnp.concatenate([p["wv1"], p["wa1"]], axis=1)
    bh = jnp.concatenate([p["bv1"], p["ba1"]], axis=1)

    # fold  q = v + a - mean(a)  into one lane-padded [256, 128] weight.
    wa2_c = p["wa2"] - jnp.mean(p["wa2"], axis=1, keepdims=True)     # [128, 5]
    ba2_c = p["ba2"] - jnp.mean(p["ba2"], axis=1, keepdims=True)     # [1, 5]
    wq = jnp.zeros((HEAD, OUT_PAD), jnp.float32)
    wq = wq.at[:128, :N_ACT].set(jnp.broadcast_to(p["wv2"], (128, N_ACT)))
    wq = wq.at[128:, :N_ACT].set(wa2_c)
    bq = jnp.zeros((1, OUT_PAD), jnp.float32).at[:, :N_ACT].set(p["bv2"] + ba2_c)

    return dict(
        w1=p["w1"].astype(jnp.bfloat16), b1=p["b1"],
        w2=p["w2"].astype(jnp.bfloat16), b2=p["b2"],
        wh=wh.astype(jnp.bfloat16), bh=bh,
        wq=wq.astype(jnp.bfloat16), bq=bq,
    )


def _cdiv(a, b):
    return -(-a // b)


def _round_up(a, m):
    return _cdiv(a, m) * m


def _nbytes(a):
    return a.size * a.dtype.itemsize


def _choose_tiling(B, tb_max=TB_MAX):
    """Pick (num_tiles, tile_rows, padded_batch) minimizing zero-row padding.

    - tiny batches: single full-extent tile, no padding at all
    - B >= 16: at least 2 (and an even number of) tiles so the batch axis
      ('parallel') can be sharded across both v7x TensorCores; tile rows are
      rounded up to a multiple of 8, so padding is at most a few rows."""
    if B < 16:
        return 1, B, B
    g = _cdiv(B, tb_max)
    g = max(g, 2)
    g += g % 2
    tb = _round_up(_cdiv(B, g), 8)
    return g, tb, g * tb


def qnet_forward(x, packed):
    """Dueling-DQN forward.  Returns f32 Q-values of shape [B, 5]."""
    if x.ndim == 1:                       # mirror `if x.dim() == 1: unsqueeze(0)`
        x = x[None, :]
    B = x.shape[0]

    grid_b, TB, B_pad = _choose_tiling(B)

    # x stays in its natural dtype/shape; only pad batch rows if required.
    xp = x if B_pad == B else jnp.pad(x, ((0, B_pad - B), (0, 0)))

    operands = (
        xp,
        packed["w1"], packed["b1"],
        packed["w2"], packed["b2"],
        packed["wh"], packed["bh"],
        packed["wq"], packed["bq"],
    )

    def resident(shape):  # weights/biases: same block every grid step -> stay in VMEM
        return pl.BlockSpec(shape, lambda i: (0, 0))

    in_specs = [
        pl.BlockSpec((TB, IN_FEATS), lambda i: (i, 0)),   # x tile (full feature dim)
        resident((IN_FEATS, H1)), resident((1, H1)),
        resident((H1, H2)), resident((1, H2)),
        resident((H2, HEAD)), resident((1, HEAD)),
        resident((HEAD, OUT_PAD)), resident((1, OUT_PAD)),
    ]
    out_specs = pl.BlockSpec((TB, OUT_PAD), lambda i: (i, 0))

    flops = 2 * B_pad * (IN_FEATS * H1 + H1 * H2 + H2 * HEAD + HEAD * OUT_PAD)
    bytes_accessed = sum(_nbytes(a) for a in operands) + B_pad * OUT_PAD * 2
    cost = pl.CostEstimate(flops=flops, transcendentals=0,
                           bytes_accessed=bytes_accessed)

    out = pl.pallas_call(
        qnet_kernel,
        out_shape=jax.ShapeDtypeStruct((B_pad, OUT_PAD), jnp.bfloat16),
        grid_spec=pltpu.PrefetchScalarGridSpec(
            num_scalar_prefetch=0,
            grid=(grid_b,),
            in_specs=in_specs,
            out_specs=out_specs,
        ),
        compiler_params=pltpu.CompilerParams(
            dimension_semantics=("parallel",),   # v7x: shard batch tiles over 2 TCs
        ),
        cost_estimate=cost,
    )(*operands)

    return out[:B, :N_ACT].astype(jnp.float32)


def qnet_reference(x, p):
    """Pure-JAX f32 reference of the original torch forward pass."""
    if x.ndim == 1:
        x = x[None, :]
    h = jax.nn.relu(x @ p["w1"] + p["b1"])
    h = jax.nn.relu(h @ p["w2"] + p["b2"])
    v = jax.nn.relu(h @ p["wv1"] + p["bv1"])
    v = v @ p["wv2"] + p["bv2"]
    a = jax.nn.relu(h @ p["wa1"] + p["ba1"])
    a = a @ p["wa2"] + p["ba2"]
    return v + a - jnp.mean(a, axis=1, keepdims=True)


if __name__ == "__main__":
    key = jax.random.PRNGKey(0)
    k_params, k_x1, k_x2 = jax.random.split(key, 3)

    params = init_qnet_params(k_params)
    packed = pack_qnet_params(params)

    # small batch: single full-extent tile, zero batch padding, grid = 1
    x_small = jax.random.normal(k_x1, (2, IN_FEATS), jnp.float32)
    q_small = jax.block_until_ready(qnet_forward(x_small, packed))
    ref_small = qnet_reference(x_small, params)
    assert q_small.shape == (2, N_ACT)
    assert jnp.allclose(q_small, ref_small, atol=3e-2, rtol=3e-2)

    # ragged batch: 2 tiles of 152 rows (B_pad=304, only 4 pad rows)
    x_big = jax.random.normal(k_x2, (300, IN_FEATS), jnp.float32)
    q_big = jax.block_until_ready(qnet_forward(x_big, packed))
    ref_big = qnet_reference(x_big, params)
    assert q_big.shape == (300, N_ACT)
    assert jnp.allclose(q_big, ref_big, atol=3e-2, rtol=3e-2)

    print("KERNEL_OK")
</pallas_src>

<mosaic_0001>
module attributes {stable_mosaic.version = 11 : i64} {
  func.func @qnet_kernel(%arg0: i32, %arg1: memref<2x405xf32, #tpu.memory_space<vmem>>, %arg2: memref<405x256xbf16, #tpu.memory_space<vmem>>, %arg3: memref<1x256xf32, #tpu.memory_space<vmem>>, %arg4: memref<256x128xbf16, #tpu.memory_space<vmem>>, %arg5: memref<1x128xf32, #tpu.memory_space<vmem>>, %arg6: memref<128x256xbf16, #tpu.memory_space<vmem>>, %arg7: memref<1x256xf32, #tpu.memory_space<vmem>>, %arg8: memref<256x128xbf16, #tpu.memory_space<vmem>>, %arg9: memref<1x128xf32, #tpu.memory_space<vmem>>, %arg10: memref<2x128xbf16, #tpu.memory_space<vmem>>) attributes {dimension_semantics = [#tpu.dimension_semantics<parallel>], iteration_bounds = array<i64: 1>, scalar_prefetch = 0 : i64, scratch_operands = 0 : i64, tpu.core_type = #tpu.core_type<tc>, window_params = [{transform_indices = @transform_0, window_bounds = array<i64: 2, 405>}, {pipeline_mode = #tpu.pipeline_mode<synchronous>, transform_indices = @transform_1, window_bounds = array<i64: 405, 256>}, {pipeline_mode = #tpu.pipeline_mode<synchronous>, transform_indices = @transform_2, window_bounds = array<i64: 1, 256>}, {pipeline_mode = #tpu.pipeline_mode<synchronous>, transform_indices = @transform_3, window_bounds = array<i64: 256, 128>}, {pipeline_mode = #tpu.pipeline_mode<synchronous>, transform_indices = @transform_4, window_bounds = array<i64: 1, 128>}, {pipeline_mode = #tpu.pipeline_mode<synchronous>, transform_indices = @transform_5, window_bounds = array<i64: 128, 256>}, {pipeline_mode = #tpu.pipeline_mode<synchronous>, transform_indices = @transform_6, window_bounds = array<i64: 1, 256>}, {pipeline_mode = #tpu.pipeline_mode<synchronous>, transform_indices = @transform_7, window_bounds = array<i64: 256, 128>}, {pipeline_mode = #tpu.pipeline_mode<synchronous>, transform_indices = @transform_8, window_bounds = array<i64: 1, 128>}, {transform_indices = @transform_9, window_bounds = array<i64: 2, 128>}]} {
    %c0 = arith.constant 0 : index
    %c0_0 = arith.constant 0 : index
    %0 = vector.load %arg1[%c0, %c0_0] : memref<2x405xf32, #tpu.memory_space<vmem>>, vector<2x405xf32>
    %1 = arith.truncf %0 : vector<2x405xf32> to vector<2x405xbf16>
    %c0_1 = arith.constant 0 : index
    %c0_2 = arith.constant 0 : index
    %2 = vector.load %arg2[%c0_1, %c0_2] : memref<405x256xbf16, #tpu.memory_space<vmem>>, vector<405x256xbf16>
    %cst = arith.constant dense<0.000000e+00> : vector<2x256xf32>
    %3 = tpu.matmul %1, %2, %cst {dimension_numbers = #tpu.dot_dimension_numbers<[1], [0], [0], [1], [0, 0, 1, 1], [], []>} : vector<2x405xbf16>, vector<405x256xbf16>, vector<2x256xf32> -> vector<2x256xf32>
    %c0_3 = arith.constant 0 : index
    %c0_4 = arith.constant 0 : index
    %4 = vector.load %arg3[%c0_3, %c0_4] : memref<1x256xf32, #tpu.memory_space<vmem>>, vector<1x256xf32>
    %5 = vector.broadcast %4 : vector<1x256xf32> to vector<2x256xf32>
    %6 = arith.addf %3, %5 : vector<2x256xf32>
    %cst_5 = arith.constant 0.000000e+00 : f32
    %7 = vector.broadcast %cst_5 : f32 to vector<2x256xf32>
    %8 = arith.maximumf %6, %7 : vector<2x256xf32>
    %9 = arith.truncf %8 : vector<2x256xf32> to vector<2x256xbf16>
    %c0_6 = arith.constant 0 : index
    %c0_7 = arith.constant 0 : index
    %10 = vector.load %arg4[%c0_6, %c0_7] : memref<256x128xbf16, #tpu.memory_space<vmem>>, vector<256x128xbf16>
    %cst_8 = arith.constant dense<0.000000e+00> : vector<2x128xf32>
    %11 = tpu.matmul %9, %10, %cst_8 {dimension_numbers = #tpu.dot_dimension_numbers<[1], [0], [0], [1], [0, 0, 1, 1], [], []>} : vector<2x256xbf16>, vector<256x128xbf16>, vector<2x128xf32> -> vector<2x128xf32>
    %c0_9 = arith.constant 0 : index
    %c0_10 = arith.constant 0 : index
    %12 = vector.load %arg5[%c0_9, %c0_10] : memref<1x128xf32, #tpu.memory_space<vmem>>, vector<1x128xf32>
    %13 = vector.broadcast %12 : vector<1x128xf32> to vector<2x128xf32>
    %14 = arith.addf %11, %13 : vector<2x128xf32>
    %cst_11 = arith.constant 0.000000e+00 : f32
    %15 = vector.broadcast %cst_11 : f32 to vector<2x128xf32>
    %16 = arith.maximumf %14, %15 : vector<2x128xf32>
    %17 = arith.truncf %16 : vector<2x128xf32> to vector<2x128xbf16>
    %c0_12 = arith.constant 0 : index
    %c0_13 = arith.constant 0 : index
    %18 = vector.load %arg6[%c0_12, %c0_13] : memref<128x256xbf16, #tpu.memory_space<vmem>>, vector<128x256xbf16>
    %cst_14 = arith.constant dense<0.000000e+00> : vector<2x256xf32>
    %19 = tpu.matmul %17, %18, %cst_14 {dimension_numbers = #tpu.dot_dimension_numbers<[1], [0], [0], [1], [0, 0, 1, 1], [], []>} : vector<2x128xbf16>, vector<128x256xbf16>, vector<2x256xf32> -> vector<2x256xf32>
    %c0_15 = arith.constant 0 : index
    %c0_16 = arith.constant 0 : index
    %20 = vector.load %arg7[%c0_15, %c0_16] : memref<1x256xf32, #tpu.memory_space<vmem>>, vector<1x256xf32>
    %21 = vector.broadcast %20 : vector<1x256xf32> to vector<2x256xf32>
    %22 = arith.addf %19, %21 : vector<2x256xf32>
    %cst_17 = arith.constant 0.000000e+00 : f32
    %23 = vector.broadcast %cst_17 : f32 to vector<2x256xf32>
    %24 = arith.maximumf %22, %23 : vector<2x256xf32>
    %25 = arith.truncf %24 : vector<2x256xf32> to vector<2x256xbf16>
    %c0_18 = arith.constant 0 : index
    %c0_19 = arith.constant 0 : index
    %26 = vector.load %arg8[%c0_18, %c0_19] : memref<256x128xbf16, #tpu.memory_space<vmem>>, vector<256x128xbf16>
    %cst_20 = arith.constant dense<0.000000e+00> : vector<2x128xf32>
    %27 = tpu.matmul %25, %26, %cst_20 {dimension_numbers = #tpu.dot_dimension_numbers<[1], [0], [0], [1], [0, 0, 1, 1], [], []>} : vector<2x256xbf16>, vector<256x128xbf16>, vector<2x128xf32> -> vector<2x128xf32>
    %c0_21 = arith.constant 0 : index
    %c0_22 = arith.constant 0 : index
    %28 = vector.load %arg9[%c0_21, %c0_22] : memref<1x128xf32, #tpu.memory_space<vmem>>, vector<1x128xf32>
    %29 = vector.broadcast %28 : vector<1x128xf32> to vector<2x128xf32>
    %30 = arith.addf %27, %29 : vector<2x128xf32>
    %31 = arith.truncf %30 : vector<2x128xf32> to vector<2x128xbf16>
    %c0_23 = arith.constant 0 : index
    %c0_24 = arith.constant 0 : index
    %32 = vector.load %arg10[%c0_23, %c0_24] : memref<2x128xbf16, #tpu.memory_space<vmem>>, vector<2x128xbf16>
    tpu.vector_store %arg10[%c0_23, %c0_24], %31 {strides = array<i32>} : memref<2x128xbf16, #tpu.memory_space<vmem>>, vector<2x128xbf16>,
    return
  }
  func.func @transform_0(%arg0: i32) -> (i32, i32) {
    %c0_i32 = arith.constant 0 : i32
    %c0_i32_0 = arith.constant 0 : i32
    return %arg0, %c0_i32 : i32, i32
  }
  func.func @transform_1(%arg0: i32) -> (i32, i32) {
    %c0_i32 = arith.constant 0 : i32
    %c0_i32_0 = arith.constant 0 : i32
    %c0_i32_1 = arith.constant 0 : i32
    return %c0_i32, %c0_i32_0 : i32, i32
  }
  func.func @transform_2(%arg0: i32) -> (i32, i32) {
    %c0_i32 = arith.constant 0 : i32
    %c0_i32_0 = arith.constant 0 : i32
    %c0_i32_1 = arith.constant 0 : i32
    return %c0_i32, %c0_i32_0 : i32, i32
  }
  func.func @transform_3(%arg0: i32) -> (i32, i32) {
    %c0_i32 = arith.constant 0 : i32
    %c0_i32_0 = arith.constant 0 : i32
    %c0_i32_1 = arith.constant 0 : i32
    return %c0_i32, %c0_i32_0 : i32, i32
  }
  func.func @transform_4(%arg0: i32) -> (i32, i32) {
    %c0_i32 = arith.constant 0 : i32
    %c0_i32_0 = arith.constant 0 : i32
    %c0_i32_1 = arith.constant 0 : i32
    return %c0_i32, %c0_i32_0 : i32, i32
  }
  func.func @transform_5(%arg0: i32) -> (i32, i32) {
    %c0_i32 = arith.constant 0 : i32
    %c0_i32_0 = arith.constant 0 : i32
    %c0_i32_1 = arith.constant 0 : i32
    return %c0_i32, %c0_i32_0 : i32, i32
  }
  func.func @transform_6(%arg0: i32) -> (i32, i32) {
    %c0_i32 = arith.constant 0 : i32
    %c0_i32_0 = arith.constant 0 : i32
    %c0_i32_1 = arith.constant 0 : i32
    return %c0_i32, %c0_i32_0 : i32, i32
  }
  func.func @transform_7(%arg0: i32) -> (i32, i32) {
    %c0_i32 = arith.constant 0 : i32
    %c0_i32_0 = arith.constant 0 : i32
    %c0_i32_1 = arith.constant 0 : i32
    return %c0_i32, %c0_i32_0 : i32, i32
  }
  func.func @transform_8(%arg0: i32) -> (i32, i32) {
    %c0_i32 = arith.constant 0 : i32
    %c0_i32_0 = arith.constant 0 : i32
    %c0_i32_1 = arith.constant 0 : i32
    return %c0_i32, %c0_i32_0 : i32, i32
  }
  func.func @transform_9(%arg0: i32) -> (i32, i32) {
    %c0_i32 = arith.constant 0 : i32
    %c0_i32_0 = arith.constant 0 : i32
    return %arg0, %c0_i32 : i32, i32
  }
}

</mosaic_0001>

<bundles_post_ra>
// kernel: tpu_custom_call.1
= control target key start
LH: loop header
LB: loop body
LE: loop exit
PB: predicated region body
PF: predicated region fallthrough
CT: control target
= control target key end

     0   :  { %14 = vsyncpa [#allocation3], 0  ;;  %s1603_s0 = inlined_call_operand.hbm [shape: f32[2,405], index: 0, kind: input, shape index: {}]   ;;  %s1604_s1 = inlined_call_operand.hbm [shape: bf16[405,256], index: 1, kind: input, shape index: {}]   ;;  %s1605_s2 = inlined_call_operand.vmem [shape: f32[1,256], index: 2, kind: input, shape index: {}]   ;;  %s1606_s3 = inlined_call_operand.hbm [shape: bf16[256,128], index: 3, kind: input, shape index: {}]   ;;  %s1607_s4 = inlined_call_operand.vmem [shape: f32[1,128], index: 4, kind: input, shape index: {}]   ;;  %s1608_s5 = inlined_call_operand.hbm [shape: bf16[128,256], index: 5, kind: input, shape index: {}]   ;;  %s1609_s6 = inlined_call_operand.vmem [shape: f32[1,256], index: 6, kind: input, shape index: {}]   ;;  %s1610_s7 = inlined_call_operand.hbm [shape: bf16[256,128], index: 7, kind: input, shape index: {}]   ;;  %s1611_s8 = inlined_call_operand.vmem [shape: f32[1,128], index: 8, kind: input, shape index: {}]   ;;  %s1612_s9 = inlined_call_operand.hbm [shape: bf16[2,128], index: 9, kind: output, shape index: {}]  }
   0x1   :  { %15 = vsyncpa [#allocation6], 0 }
   0x2   :  { %16 = vsyncpa [#allocation9], 0 }
   0x3   :  { %17 = vsyncpa [#allocation4], 0  ;;  %s1491_s30 = smov [#allocation5]  }
   0x4   :  { %s33_s10 = sshll.u32 %s1491_s30, 4  ;;  %s34_s10 = int_to_ptr.vmem [resolvable:$true] %s33_s10 }
   0x5   :  { %s1371_s11 = scalar_lea.vmem %s34_s10, 6528  ;;  %p1376_p1 = scmp.lt.s32.totalorder %s34_s10, %s34_s10 }
   0x6   :  { %p1372_p0 = scmp.ne.s32.totalorder %s34_s10, %s1371_s11  ;;  %p1377_p2 = scmp.lt.s32.totalorder %s1371_s11, %s1371_s11 }
   0x8   :  { %p1378_p3 = por %p1377_p2, %p1376_p1 }
   0xa   :  { %p1379_p4 = pnand %p1378_p3, %p1372_p0 }
   0xc   :  { %1382 = shalt.err (!%p1379_p4)
}
   0xd   :  { %s1492_s12 = smov 128   ;;  %s1493_s13 = smov 8  }
   0xe   :  { %39 = dma.hbm_to_vmem [thread:$0]  %s1604_s1, 6528, %s34_s10, [#allocation6], %s1492_s12, %s1492_s12, %s1493_s13  }
   0xf   :  { %s1494_s16 = smov [#allocation8]   ;;  %s1495_s18 = smov [#allocation2]  }
  0x10   :  { %s61_s17 = sshll.u32 %s1494_s16, 4  ;;  %s24_s19 = sshll.u32 %s1495_s18, 4  ;;  %s62_s17 = int_to_ptr.vmem [resolvable:$true] %s61_s17  ;;  %s25_s19 = int_to_ptr.vmem [resolvable:$true] %s24_s19 }
  0x11   :  { %s1391_s20 = scalar_lea.vmem %s62_s17, 2048  ;;  %p1396_p6 = scmp.lt.s32.totalorder %s62_s17, %s62_s17 }
  0x12   :  { %p1392_p5 = scmp.ne.s32.totalorder %s62_s17, %s1391_s20  ;;  %p1397_p7 = scmp.lt.s32.totalorder %s1391_s20, %s1391_s20 }
  0x14   :  { %p1398_p8 = por %p1397_p7, %p1396_p6 }
  0x16   :  { %p1399_p9 = pnand %p1398_p8, %p1392_p5 }
  0x18   :  { %1402 = shalt.err (!%p1399_p9)
}
  0x19   :  { %67 = dma.hbm_to_vmem [thread:$0]  %s1608_s5, 2048, %s62_s17, [#allocation9], %s1492_s12, %s1492_s12, %s1493_s13  }
  0x1a   :  { %s1411_s23 = scalar_lea.vmem %s25_s19, 128  ;;  %p1416_p11 = scmp.lt.s32.totalorder %s25_s19, %s25_s19 }
  0x1b   :  { %p1412_p10 = scmp.ne.s32.totalorder %s25_s19, %s1411_s23  ;;  %p1417_p12 = scmp.lt.s32.totalorder %s1411_s23, %s1411_s23 }
  0x1d   :  { %p1418_p13 = por %p1417_p12, %p1416_p11 }
  0x1f   :  { %p1419_p0 = pnand %p1418_p13, %p1412_p10 }
  0x21   :  { %1422 = shalt.err (!%p1419_p0)
}
  0x22   :  { %27 = dma.hbm_to_vmem [thread:$0]  %s1603_s0, 128, %s25_s19, [#allocation3]  }
  0x23   :  { %s1496_s25 = smov [#allocation7]  }
  0x24   :  { %s47_s26 = sshll.u32 %s1496_s25, 4  ;;  %s48_s26 = int_to_ptr.vmem [resolvable:$true] %s47_s26 }
  0x25   :  { %s1431_s27 = scalar_lea.vmem %s48_s26, 2048  ;;  %p1436_p2 = scmp.lt.s32.totalorder %s48_s26, %s48_s26 }
  0x26   :  { %p1432_p1 = scmp.ne.s32.totalorder %s48_s26, %s1431_s27  ;;  %p1437_p3 = scmp.lt.s32.totalorder %s1431_s27, %s1431_s27 }
  0x28   :  { %p1438_p4 = por %p1437_p3, %p1436_p2 }
  0x2a   :  { %p1439_p5 = pnand %p1438_p4, %p1432_p1 }
  0x2c   :  { %1442 = shalt.err (!%p1439_p5)
}
  0x2d   :  { %s1497_s5 = smov 64   ;;  %s1498_s28 = smov 4  }
  0x2e   :  { %53 = dma.hbm_to_vmem [thread:$0]  %s1606_s3, 2048, %s48_s26, [#allocation6], %s1497_s5, %s1497_s5, %s1498_s28  }
  0x2f   :  { %s1499_s10 = smov [#allocation10]  }
  0x30   :  { %s75_s11 = sshll.u32 %s1499_s10, 4  ;;  %s76_s11 = int_to_ptr.vmem [resolvable:$true] %s75_s11 }
  0x31   :  { %s1451_s0 = scalar_lea.vmem %s76_s11, 2048  ;;  %p1456_p7 = scmp.lt.s32.totalorder %s76_s11, %s76_s11 }
  0x32   :  { %p1452_p6 = scmp.ne.s32.totalorder %s76_s11, %s1451_s0  ;;  %p1457_p8 = scmp.lt.s32.totalorder %s1451_s0, %s1451_s0 }
  0x34   :  { %p1458_p9 = por %p1457_p8, %p1456_p7 }
  0x36   :  { %p1459_p10 = pnand %p1458_p9, %p1452_p6 }
  0x38   :  { %1462 = shalt.err (!%p1459_p10)
}
  0x39   :  { %81 = dma.hbm_to_vmem [thread:$0]  %s1610_s7, 2048, %s76_s11, [#allocation9], %s1497_s5, %s1497_s5, %s1498_s28  }
  0x3a   :  { %1483 = dma.done.wait [#allocation3], 128  }
  0x3b   :  { %1484 = vsyncadd [#allocation3], 4294967168 }
  0x3c   :  { %1485 = dma.done.wait [#allocation6], 8576  }
  0x3d   :  { %1486 = vsyncadd [#allocation6], 4294958720 }
  0x3e   :  { %1487 = dma.done.wait [#allocation9], 4096  }
  0x3f   :  { %1488 = vsyncadd [#allocation9], 4294963200  ;;  %v1229_v0 = vld [vmem:[#allocation5 + $0x74] ss:$8 sps:$4 sm:$0xff]   ;;  %v1231_v1 = vld [vmem:[#allocation5 + $0x70] ss:$8 sps:$4 sm:$0xff]   ;;  %v106_v23 = vlaneseq }
  0x40   :  { %459 = vmatprep.subr.bf16.mxu0 %v1229_v0  ;;  %v1232_v2 = vld [vmem:[#allocation5 + $0x64] ss:$8 sps:$4 sm:$0xff]   ;;  %v1234_v3 = vld [vmem:[#allocation5 + $0x60] ss:$8 sps:$4 sm:$0xff]   ;;  %v1235_v4 = vld [vmem:[#allocation5 + $0x54] ss:$8 sps:$4 sm:$0xff]  }
  0x41   :  { %460 = vmatpush1.bf16.msra.mxu0 %v1231_v1  ;;  %v1237_v5 = vld [vmem:[#allocation5 + $0x50] ss:$8 sps:$4 sm:$0xff]   ;;  %v1238_v6 = vld [vmem:[#allocation5 + $0x44] ss:$8 sps:$4 sm:$0xff]   ;;  %v1246_v7 = vld [vmem:[#allocation5 + $0x174] ss:$8 sps:$4 sm:$0xff]  }
  0x42   :  { %461 = vmatprep.subr.bf16.mxu0 %v1232_v2  ;;  %v1249_v8 = vld [vmem:[#allocation5 + $0x170] ss:$8 sps:$4 sm:$0xff]   ;;  %500 = vmatprep.subr.bf16.mxu1 %v1246_v7  ;;  %v1240_v9 = vld [vmem:[#allocation5 + $0x40] ss:$8 sps:$4 sm:$0xff]   ;;  %v1252_v10 = vld [vmem:[#allocation5 + $0x164] ss:$8 sps:$4 sm:$0xff]  }
  0x43   :  { %501 = vmatpush1.bf16.msra.mxu1 %v1249_v8  ;;  %v1255_v11 = vld [vmem:[#allocation5 + $0x160] ss:$8 sps:$4 sm:$0xff]   ;;  %v1241_v12 = vld [vmem:[#allocation5 + $0x34] ss:$8 sps:$4 sm:$0xff]   ;;  %v1243_v14 = vld [vmem:[#allocation5 + $0x30] ss:$8 sps:$4 sm:$0xff]  }
  0x44   :  { %502 = vmatprep.subr.bf16.mxu1 %v1252_v10  ;;  %v1258_v13 = vld [vmem:[#allocation5 + $0x154] ss:$8 sps:$4 sm:$0xff]   ;;  %v1261_v15 = vld [vmem:[#allocation5 + $0x150] ss:$8 sps:$4 sm:$0xff]   ;;  %v1244_v16 = vld [vmem:[#allocation5 + $0x24] ss:$8 sps:$4 sm:$0xff]  }
  0x45   :  { %462 = vmatpush1.bf16.msra.mxu0 %v1234_v3  ;;  %v1264_v17 = vld [vmem:[#allocation5 + $0x144] ss:$8 sps:$4 sm:$0xff]   ;;  %v1248_v18 = vld [vmem:[#allocation5 + $0x20] ss:$8 sps:$4 sm:$0xff]   ;;  %v1250_v19 = vld [vmem:[#allocation5 + $0x14] ss:$8 sps:$4 sm:$0xff]  }
  0x46   :  { %463 = vmatprep.subr.bf16.mxu0 %v1235_v4  ;;  %v1267_v20 = vld [vmem:[#allocation5 + $0x140] ss:$8 sps:$4 sm:$0xff]   ;;  %v1270_v21 = vld [vmem:[#allocation5 + $0x134] ss:$8 sps:$4 sm:$0xff]   ;;  %v1254_v22 = vld [vmem:[#allocation5 + $0x10] ss:$8 sps:$4 sm:$0xff]  }
  0x47   :  { %503 = vmatpush1.bf16.msra.mxu1 %v1255_v11  ;;  %v1273_v24 = vld [vmem:[#allocation5 + $0x130] ss:$8 sps:$4 sm:$0xff]   ;;  %v1500_v25 = vmov 1983009808   ;;  %v1256_v27 = vld [vmem:[#allocation5 + $0x4] ss:$8 sps:$4 sm:$0xff]  }
  0x48   :  { %504 = vmatprep.subr.bf16.mxu1 %v1258_v13  ;;  %v104_v26 = vunpack.c.l.s4 %v1500_v25  ;;  %v1276_v28 = vld [vmem:[#allocation5 + $0x124] ss:$8 sps:$4 sm:$0xff]   ;;  %vm449_vm0 = vcmask 1041408   ;;  %v1569_v29 = vshrl.u32 %v106_v23, 7  ;;  %v1260_v30 = vld [vmem:[#allocation5] ss:$8 sps:$4 sm:$0xff]  }
  0x49   :  { %464 = vmatpush1.bf16.msra.mxu0 %v1237_v5  ;;  %v1262_v31 = vld [vmem:[#allocation5 + $0xf4] ss:$8 sps:$4 sm:$0xff]   ;;  %v1279_v32 = vld [vmem:[#allocation5 + $0x120] ss:$8 sps:$4 sm:$0xff]   ;;  %v1266_v36 = vld [vmem:[#allocation5 + $0xf0] ss:$8 sps:$4 sm:$0xff]  }
  0x4a   :  { %465 = vmatprep.subr.bf16.mxu0 %v1238_v6  ;;  %v105_v33 = vunpack.c.0.s8 %v104_v26  ;;  %v1282_v34 = vld [vmem:[#allocation5 + $0x114] ss:$8 sps:$4 sm:$0xff]   ;;  %vm450_vm1 = vcmask 1042432   ;;  %v1501_v37 = vmov 65535   ;;  %v1268_v39 = vld [vmem:[#allocation5 + $0xe4] ss:$8 sps:$4 sm:$0xff]  }
  0x4b   :  { %505 = vmatpush1.bf16.msra.mxu1 %v1261_v15  ;;  %v177_v35 = vld [vmem:[#allocation5 + $0x190] sm:$0x77]  ;;  %v451_v38 = vsel %vm449_vm0, 4294967295, %v1501_v37  ;;  %v1288_v42 = vld [vmem:[#allocation5 + $0x104] ss:$8 sps:$4 sm:$0xff]   ;;  %v100_v44 = vld [vmem:[#allocation2] sm:$0xff] }
  0x4c   :  { %506 = vmatprep.subr.bf16.mxu1 %v1264_v17  ;;  %v1285_v40 = vld [vmem:[#allocation5 + $0x110] ss:$8 sps:$4 sm:$0xff]   ;;  %v108_v41 = vsub.s32 %v105_v33, %v1569_v29  ;;  %v1120_v43 = vcombine.high %v177_v35, %v177_v35  ;;  %v452_v45 = vsel %vm450_vm1, %v451_v38, 0  ;;  %v102_v46 = vcombine.high %v100_v44, %v100_v44  ;;  %v1272_v48 = vld [vmem:[#allocation5 + $0xe0] ss:$8 sps:$4 sm:$0xff]   ;;  %s1503_s17 = smov [#allocation11]  }
  0x4d   :  { %466 = vmatpush1.bf16.msra.mxu0 %v1240_v9  ;;  %v1291_v49 = vld [vmem:[#allocation5 + $0x100] ss:$8 sps:$4 sm:$0xff]   ;;  %v1119_v50 = vcombine.low %v177_v35, %v177_v35  ;;  %v1274_v53 = vld [vmem:[#allocation5 + $0xd4] ss:$8 sps:$4 sm:$0xff]   ;;  %vm445_vm2 = vcmask 171008   ;;  %s1058_s18 = sshll.u32 %s1503_s17, 4  ;;  %s1059_s18 = int_to_ptr.vmem [resolvable:$true] %s1058_s18 }
  0x4e   :  { %467 = vmatprep.subr.bf16.mxu0 %v1241_v12  ;;  %v1572_v47 = vrot.slane %v100_v44, %v108_v41  ;;  %v116_v51 = vrot.slane %v102_v46, %v108_v41  ;;  %v457_v54 = vand.u32 %v1120_v43, %v452_v45  ;;  %v1278_v57 = vld [vmem:[#allocation5 + $0xd0] ss:$8 sps:$4 sm:$0xff]   ;;  %v1280_v58 = vld [vmem:[#allocation5 + $0xc4] ss:$8 sps:$4 sm:$0xff]   ;;  %v1284_v62 = vld [vmem:[#allocation5 + $0xc0] ss:$8 sps:$4 sm:$0xff]   ;;  %p1468_p12 = scmp.lt.s32.totalorder %s1059_s18, %s1059_s18 }
  0x4f   :  { %507 = vmatpush1.bf16.msra.mxu1 %v1267_v20  ;;  %v454_v59 = vand.u32 %v1119_v50, %v452_v45  ;;  %v1299_v61 = vld [vmem:[#allocation5 + $0x184] ss:$8 sps:$4 sm:$0xff]   ;;  %v1302_v63 = vld [vmem:[#allocation5 + $0x180] ss:$8 sps:$4 sm:$0xff]   ;;  %v1286_v0 = vld [vmem:[#allocation5 + $0xb4] ss:$8 sps:$4 sm:$0xff]  }
  0x50   :  { %508 = vmatprep.subr.bf16.mxu1 %v1270_v21  ;;  %v117_v52 = vcombine.high %v1572_v47, %v1572_v47  ;;  %v118_v55 = vcombine.high %v116_v51, %v116_v51  ;;  %v1307_v1 = vld [vmem:[#allocation7 + $0x78] sm:$0xff]   ;;  %v1292_v4 = vld [vmem:[#allocation5 + $0xa4] ss:$8 sps:$4 sm:$0xff]   ;;  %v125_v5 = vpack.c.bf16 %v116_v51, %v116_v51  ;;  %v1295_v7 = vld [vmem:[#allocation5 + $0xa0] ss:$8 sps:$4 sm:$0xff]   ;;  %v123_v17 = vpack.c.bf16 %v1572_v47, %v1572_v47  ;;  %s1463_s19 = scalar_lea.vmem %s1059_s18, 16 }
  0x51   :  { %468 = vmatpush1.bf16.msra.mxu0 %v1243_v14  ;;  %v1290_v2 = vld [vmem:[#allocation5 + $0xb0] ss:$8 sps:$4 sm:$0xff]   ;;  %v1309_v6 = vld [vmem:[#allocation7 + $0x70] sm:$0xff]   ;;  %v1297_v9 = vld [vmem:[#allocation5 + $0x94] ss:$8 sps:$4 sm:$0xff]   ;;  %v182_v43 = vsub.s32 0, %v1569_v29  ;;  %p1464_p11 = scmp.ne.s32.totalorder %s1059_s18, %s1463_s19 }
  0x52   :  { %469 = vmatprep.subr.bf16.mxu0 %v1244_v16  ;;  %v124_v56 = vpack.c.bf16 %v117_v52, %v117_v52  ;;  %v126_v60 = vpack.c.bf16 %v118_v55, %v118_v55  ;;  %v1308_v3 = vld [vmem:[#allocation7 + $0x38] sm:$0xff]   ;;  %v1310_v8 = vld [vmem:[#allocation7 + $0x30] sm:$0xff]   ;;  %v1311_v10 = vld [vmem:[#allocation7 + $0x68] sm:$0xff]   ;;  %v186_v45 = vsub.s32 1, %v1569_v29  ;;  %s1467_s20 = scalar_lea.vmem %s1059_s18, 32 }
  0x53   :  { %509 = vmatpush1.bf16.msra.mxu1 %v1273_v24  ;;  %v1301_v11 = vld [vmem:[#allocation5 + $0x90] ss:$8 sps:$4 sm:$0xff]   ;;  %v1312_v12 = vld [vmem:[#allocation7 + $0x28] sm:$0xff]   ;;  %v1317_v20 = vld [vmem:[#allocation7 + $0x50] sm:$0xff]   ;;  %p1469_p13 = scmp.lt.s32.totalorder %s1467_s20, %s1463_s19 }
  0x54   :  { %510 = vmatprep.subr.bf16.mxu1 %v1276_v28  ;;  %1121 = vmatprep.mubr.msk.bf16.mxu1 %vm445_vm2, %v126_v60  ;;  %v1304_v13 = vld [vmem:[#allocation5 + $0x84] ss:$8 sps:$4 sm:$0xff]   ;;  %v1313_v14 = vld [vmem:[#allocation7 + $0x60] sm:$0xff]   ;;  %v1306_v15 = vld [vmem:[#allocation5 + $0x80] ss:$8 sps:$4 sm:$0xff]  }
  0x55   :  { %470 = vmatpush1.bf16.msra.mxu0 %v1248_v18  ;;  %491 = vmatprep.mubr.bf16.mxu0 %v124_v56  ;;  %v1314_v16 = vld [vmem:[#allocation7 + $0x20] sm:$0xff]   ;;  %v1315_v18 = vld [vmem:[#allocation7 + $0x58] sm:$0xff]   ;;  %v1318_v21 = vld [vmem:[#allocation7 + $0x10] sm:$0xff]   ;;  %p1470_p0 = por %p1469_p13, %p1468_p12 }
  0x56   :  { %471 = vmatprep.subr.bf16.mxu0 %v1250_v19  ;;  %v1316_v19 = vld [vmem:[#allocation7 + $0x18] sm:$0xff]   ;;  %v1320_v23 = vld [vmem:[#allocation7 + $0x8] sm:$0xff]   ;;  %v1321_v24 = vld [vmem:[#allocation7 + $0x40] sm:$0xff]  }
  0x57   :  { %511 = vmatpush1.bf16.msra.mxu1 %v1279_v32  ;;  %v1322_v25 = vld [vmem:[#allocation7] sm:$0xff]   ;;  %v1323_v26 = vld [vmem:[#allocation8 + $0x70] ss:$8 sps:$4 sm:$0xff]   ;;  %v1337_v35 = vld [vmem:[#allocation8 + $0x34] ss:$8 sps:$4 sm:$0xff]   ;;  %p1471_p1 = pnand %p1470_p0, %p1464_p11 }
  0x58   :  { %512 = vmatprep.subr.bf16.mxu1 %v1282_v34  ;;  %v1328_v28 = vld [vmem:[#allocation8 + $0x64] ss:$8 sps:$4 sm:$0xff]   ;;  %v1329_v32 = vld [vmem:[#allocation8 + $0x50] ss:$8 sps:$4 sm:$0xff]   ;;  %v1332_v34 = vld [vmem:[#allocation8 + $0x40] ss:$8 sps:$4 sm:$0xff]  }
  0x59   :  { %472 = vmatpush1.bf16.msra.mxu0 %v1254_v22  ;;  %v1319_v22 = vld [vmem:[#allocation7 + $0x48] sm:$0xff]   ;;  %v178_v44 = vld [vmem:[%s1605_s2] sm:$0x3]  ;;  %v1343_v60 = vld [vmem:[#allocation8 + $0x14] ss:$8 sps:$4 sm:$0xff]  }
  0x5a   :  { %473 = vmatprep.subr.bf16.mxu0 %v1256_v27  ;;  %v1325_v27 = vld [vmem:[#allocation8 + $0x74] ss:$8 sps:$4 sm:$0xff]   ;;  %v1334_v33 = vld [vmem:[#allocation8 + $0x44] ss:$8 sps:$4 sm:$0xff]   ;;  %v1338_v38 = vld [vmem:[#allocation8 + $0x20] ss:$8 sps:$4 sm:$0xff]   ;;  %v183_v46 = vrot.slane %v178_v44, %v182_v43  ;;  %v187_v47 = vrot.slane %v178_v44, %v186_v45 }
  0x5b   :  { %513 = vmatpush1.bf16.msra.mxu1 %v1285_v40  ;;  %v1340_v37 = vld [vmem:[#allocation8 + $0x24] ss:$8 sps:$4 sm:$0xff]  }
  0x5c   :  { %514 = vmatprep.subr.bf16.mxu1 %v1288_v42 }
  0x5d   :  { %474 = vmatpush1.bf16.msra.mxu0 %v1260_v30  ;;  %v1326_v30 = vld [vmem:[#allocation8 + $0x60] ss:$8 sps:$4 sm:$0xff]  }
  0x5e   :  { %475 = vmatprep.subr.bf16.mxu0 %v1262_v31  ;;  %v1331_v31 = vld [vmem:[#allocation8 + $0x54] ss:$8 sps:$4 sm:$0xff]  }
  0x5f   :  { %515 = vmatpush1.bf16.msra.mxu1 %v1291_v49 }
  0x60   :  { %528 = vmatprep.subr.bf16.mxu1 %v457_v54 }
  0x61   :  { %476 = vmatpush2.bf16.msra.mxu0 %v1266_v36  ;;  %v1335_v36 = vld [vmem:[#allocation8 + $0x30] ss:$8 sps:$4 sm:$0xff]  }
  0x62   :  { %477 = vmatprep.subr.bf16.mxu0 %v1268_v39 }
  0x63   :  { %529 = vmatpush2.bf16.msra.mxu1 %v454_v59 }
  0x64   :  { %530 = vmatprep.subr.bf16.mxu1 %v1299_v61  ;;  %v1341_v61 = vld [vmem:[#allocation8 + $0x10] ss:$8 sps:$4 sm:$0xff]  }
  0x65   :  { %478 = vmatpush2.bf16.msra.mxu0 %v1272_v48 }
  0x66   :  { %479 = vmatprep.subr.bf16.mxu0 %v1274_v53 }
  0x67   :  { %531 = vmatpush2.bf16.msra.mxu1 %v1302_v63  ;;  %v1344_v63 = vld [vmem:[#allocation8] ss:$8 sps:$4 sm:$0xff]  }
  0x68   :  { %1172 = vmatprep.subr.bf16.mxu1 %v1307_v1  ;;  %v1347_v1 = vld [vmem:[#allocation10 + $0x78] sm:$0xff]  }
  0x69   :  { %480 = vmatpush2.bf16.msra.mxu0 %v1278_v57 }
  0x6a   :  { %481 = vmatprep.subr.bf16.mxu0 %v1280_v58  ;;  %533 = vmatmul.mubr.bf16.vlgmr.msra.gmra.mxu1 %v125_v5  ;;  %v1351_v5 = vld [vmem:[#allocation10 + $0x68] sm:$0xff]  }
  0x6b   :  { %1173 = vmatpush3.bf16.msra.mxu1 %v1308_v3  ;;  %v1349_v3 = vld [vmem:[#allocation10 + $0x70] sm:$0xff]  }
  0x6c   :  { %1174 = vmatprep.subr.bf16.mxu1 %v1309_v6  ;;  %v1352_v6 = vld [vmem:[#allocation10 + $0x28] sm:$0xff]  }
  0x6d   :  { %482 = vmatpush2.bf16.msra.mxu0 %v1284_v62  ;;  %v1346_v62 = vld [vmem:[#allocation8 + $0x4] ss:$8 sps:$4 sm:$0xff]  }
  0x6e   :  { %483 = vmatprep.subr.bf16.mxu0 %v1286_v0  ;;  %v1502_v0 = vmov 0  }
  0x6f   :  { %1175 = vmatpush3.bf16.msra.mxu1 %v1310_v8  ;;  %v1354_v8 = vld [vmem:[#allocation10 + $0x20] sm:$0xff]  }
  0x70   :  { %1176 = vmatprep.subr.bf16.mxu1 %v1311_v10  ;;  %v1356_v10 = vld [vmem:[#allocation10 + $0x18] sm:$0xff]  }
  0x71   :  { %484 = vmatpush2.bf16.msra.mxu0 %v1290_v2  ;;  %v1348_v2 = vld [vmem:[#allocation10 + $0x38] sm:$0xff]  }
  0x72   :  { %485 = vmatprep.subr.bf16.mxu0 %v1292_v4  ;;  %v1350_v4 = vld [vmem:[#allocation10 + $0x30] sm:$0xff]  }
  0x73   :  { %1177 = vmatpush3.bf16.msra.mxu1 %v1312_v12  ;;  %v1358_v12 = vld [vmem:[#allocation10 + $0x10] sm:$0xff]  }
  0x74   :  { %1178 = vmatprep.subr.bf16.mxu1 %v1313_v14  ;;  %v1122_v14 = vld [vmem:[%s1607_s4] ss:$0 sm:$0xff] }
  0x75   :  { %486 = vmatpush2.bf16.msra.mxu0 %v1295_v7  ;;  %v1353_v7 = vld [vmem:[#allocation10 + $0x60] sm:$0xff]  }
  0x76   :  { %487 = vmatprep.subr.bf16.mxu0 %v1297_v9  ;;  %v1355_v9 = vld [vmem:[#allocation10 + $0x58] sm:$0xff]  }
  0x77   :  { %1179 = vmatpush3.bf16.msra.mxu1 %v1314_v16 }
  0x78   :  { %1180 = vmatprep.subr.bf16.mxu1 %v1315_v18 }
  0x79   :  { %488 = vmatpush2.bf16.msra.mxu0 %v1301_v11  ;;  %v1357_v11 = vld [vmem:[#allocation10 + $0x50] sm:$0xff]  }
  0x7a   :  { %489 = vmatprep.subr.bf16.mxu0 %v1304_v13 }
  0x7b   :  { %1181 = vmatpush3.bf16.msra.mxu1 %v1316_v19 }
  0x7c   :  { %1182 = vmatprep.subr.bf16.mxu1 %v1317_v20 }
  0x7d   :  { %490 = vmatpush2.bf16.msra.mxu0 %v1306_v15 }
  0x7e   :  { %830 = vmatprep.subr.bf16.mxu0 %v1325_v27 }
  0x7f   :  { %1183 = vmatpush3.bf16.msra.mxu1 %v1318_v21 }
  0x80   :  { %492 = vmatmul.mubr.bf16.vlgmr.msra.gmra.mxu0 %v123_v17  ;;  %1184 = vmatprep.subr.bf16.mxu1 %v1319_v22  ;;  %v1359_v22 = vld [vmem:[#allocation10 + $0x48] sm:$0xff]  }
  0x81   :  { %831 = vmatpush1.bf16.msra.mxu0 %v1323_v26  ;;  %862 = vmatprep.mubr.bf16.mxu0 %v1502_v0  ;;  %v738_v26 = vld [vmem:[%s1609_s6] sm:$0x3] }
  0x82   :  { %832 = vmatprep.subr.bf16.mxu0 %v1328_v28  ;;  %v743_v27 = vrot.slane %v738_v26, %v182_v43  ;;  %v747_v28 = vrot.slane %v738_v26, %v186_v45 }
  0x83   :  { %1185 = vmatpush3.bf16.msra.mxu1 %v1320_v23  ;;  %v1360_v23 = vld [vmem:[#allocation10 + $0x8] sm:$0xff]  }
  0x84   :  { %1186 = vmatprep.subr.bf16.mxu1 %v1321_v24  ;;  %v1361_v24 = vld [vmem:[#allocation10 + $0x40] sm:$0xff]  }
  0x85   :  { %833 = vmatpush1.bf16.msra.mxu0 %v1326_v30 }
  0x86   :  { %834 = vmatprep.subr.bf16.mxu0 %v1331_v31 }
  0x87   :  { %1187 = vmatpush3.bf16.msra.mxu1 %v1322_v25  ;;  %v1362_v25 = vld [vmem:[#allocation10] sm:$0xff]  }
  0x88   :  { %1194 = vmatprep.subr.bf16.mxu1 %v1347_v1 }
  0x89   :  { %835 = vmatpush1.bf16.msra.mxu0 %v1329_v32 }
  0x8a   :  { %836 = vmatprep.subr.bf16.mxu0 %v1334_v33 }
  0x8d   :  { %837 = vmatpush1.bf16.msra.mxu0 %v1332_v34 }
  0x8e   :  { %838 = vmatprep.subr.bf16.mxu0 %v1337_v35 }
  0x91   :  { %839 = vmatpush1.bf16.msra.mxu0 %v1335_v36 }
  0x92   :  { %840 = vmatprep.subr.bf16.mxu0 %v1340_v37 }
  0x95   :  { %841 = vmatpush1.bf16.msra.mxu0 %v1338_v38 }
  0x96   :  { %842 = vmatprep.subr.bf16.mxu0 %v1343_v60 }
  0x99   :  { %843 = vmatpush1.bf16.msra.mxu0 %v1341_v61 }
  0x9a   :  { %844 = vmatprep.subr.bf16.mxu0 %v1346_v62 }
  0x9d   :  { %845 = vmatpush1.bf16.msra.mxu0 %v1344_v63 }
 0x12a   :  { %v534_v39 = vpop.f32.mrf.mxu1 }
 0x12c   :  { %v536_v40 = vpop.f32.mrf.mxu1 }
 0x12e   :  { %v538_v41 = vpop.f32.mrf.mxu1 }
 0x12f   :  { %v1155_v41 = vld [vmem:[%s1611_s8] ss:$0 sm:$0xff] }
 0x130   :  { %v539_v42 = vpop.f32.mrf.mxu1 }
 0x140   :  { %v493_v48 = vpop.f32.mrf.mxu0 }
 0x141   :  { %v494_v49 = vadd.f32 %v493_v48, %v183_v46 }
 0x142   :  { %v495_v50 = vpop.f32.mrf.mxu0 }
 0x143   :  { %v535_v51 = vadd.f32 %v534_v39, %v494_v49  ;;  %v496_v52 = vadd.f32 %v495_v50, %v187_v47 }
 0x144   :  { %v497_v53 = vpop.f32.mrf.mxu0 }
 0x145   :  { %v537_v54 = vadd.f32 %v536_v40, %v496_v52  ;;  %v541_v55 = vmax.f32 %v535_v51, 0.0 }
 0x146   :  { %v498_v56 = vpop.f32.mrf.mxu0 }
 0x147   :  { %v542_v57 = vmax.f32 %v537_v54, 0.0  ;;  %v543_v59 = vpack.c.bf16 %v541_v55, %v541_v55 }
 0x149   :  { %v544_v58 = vpack.c.bf16 %v542_v57, %v542_v57 }
 0x14b   :  { %712 = vmatprep.mubr.bf16.mxu1 %v544_v58 }
 0x14c   :  { %713 = vmatmul.mubr.bf16.vlgmr.msra.gmra.mxu1 %v543_v59 }
 0x14d   :  { %1195 = vmatpush3.bf16.msra.mxu1 %v1348_v2 }
 0x14e   :  { %1196 = vmatprep.subr.bf16.mxu1 %v1349_v3 }
 0x151   :  { %1197 = vmatpush3.bf16.msra.mxu1 %v1350_v4 }
 0x152   :  { %1198 = vmatprep.subr.bf16.mxu1 %v1351_v5 }
 0x155   :  { %1199 = vmatpush3.bf16.msra.mxu1 %v1352_v6 }
 0x156   :  { %1200 = vmatprep.subr.bf16.mxu1 %v1353_v7 }
 0x159   :  { %1201 = vmatpush3.bf16.msra.mxu1 %v1354_v8 }
 0x15a   :  { %1202 = vmatprep.subr.bf16.mxu1 %v1355_v9 }
 0x15d   :  { %1203 = vmatpush3.bf16.msra.mxu1 %v1356_v10 }
 0x15e   :  { %1204 = vmatprep.subr.bf16.mxu1 %v1357_v11 }
 0x161   :  { %1205 = vmatpush3.bf16.msra.mxu1 %v1358_v12 }
 0x162   :  { %1206 = vmatprep.subr.bf16.mxu1 %v1359_v22 }
 0x165   :  { %1207 = vmatpush3.bf16.msra.mxu1 %v1360_v23 }
 0x166   :  { %1208 = vmatprep.subr.bf16.mxu1 %v1361_v24 }
 0x169   :  { %1209 = vmatpush3.bf16.msra.mxu1 %v1362_v25 }
 0x20c   :  { %v1188_v13 = vpop.f32.mrf.mxu1 }
 0x20e   :  { %v1189_v15 = vpop.f32.mrf.mxu1 }
 0x20f   :  { %v1190_v16 = vadd.f32 %v1189_v15, %v1188_v13 }
 0x210   :  { %v1191_v17 = vpop.f32.mrf.mxu1 }
 0x211   :  { %v715_v18 = vadd.f32 %v1190_v16, %v1122_v14 }
 0x212   :  { %v1192_v19 = vpop.f32.mrf.mxu1 }
 0x213   :  { %v720_v20 = vmax.f32 %v715_v18, 0.0 }
 0x215   :  { %v721_v21 = vpack.c.bf16 %v720_v20, %v720_v20 }
 0x217   :  { %863 = vmatmul.mubr.bf16.vlgmr.msra.gmra.mxu0 %v721_v21 }
 0x2d7   :  { %v864_v30 = vpop.f32.mrf.mxu0 }
 0x2d8   :  { %v865_v31 = vadd.f32 %v864_v30, %v743_v27 }
 0x2d9   :  { %v866_v32 = vpop.f32.mrf.mxu0 }
 0x2da   :  { %v867_v33 = vadd.f32 %v866_v32, %v747_v28  ;;  %v871_v34 = vmax.f32 %v865_v31, 0.0 }
 0x2db   :  { %v868_v35 = vpop.f32.mrf.mxu0 }
 0x2dc   :  { %v872_v36 = vmax.f32 %v867_v33, 0.0  ;;  %v873_v39 = vpack.c.bf16 %v871_v34, %v871_v34 }
 0x2dd   :  { %v869_v37 = vpop.f32.mrf.mxu0 }
 0x2de   :  { %v874_v38 = vpack.c.bf16 %v872_v36, %v872_v36 }
 0x2e0   :  { %1042 = vmatprep.mubr.bf16.mxu1 %v874_v38 }
 0x2e1   :  { %1043 = vmatmul.mubr.bf16.vlgmr.msra.gmra.mxu1 %v873_v39 }
 0x3a1   :  { %v1210_v40 = vpop.f32.mrf.mxu1 }
 0x3a3   :  { %v1211_v42 = vpop.f32.mrf.mxu1 }
 0x3a4   :  { %v1212_v29 = vadd.f32 %v1211_v42, %v1210_v40 }
 0x3a5   :  { %v1213_v43 = vpop.f32.mrf.mxu1 }
 0x3a6   :  { %v1045_v44 = vadd.f32 %v1212_v29, %v1155_v41 }
 0x3a7   :  { %v1214_v45 = vpop.f32.mrf.mxu1 }
 0x3a8   :  { %v1050_v46 = vpack.c.bf16 %v1045_v44, %v1045_v44 }
 0x3aa   :  { %1051 = vst [vmem:[#allocation11] sm:$0x1] %v1050_v46 }
 0x3ab   :  { %1474 = shalt.err (!%p1471_p1)
}
 0x3ac   :  { %1061 = dma.vmem_to_hbm [thread:$0]  %s1059_s18, 16, %s1612_s9, [#allocation4]  }
 0x3ad   :  { %1489 = dma.done.wait [#allocation4], 16  }
 0x3ae   :  { %1490 = vsyncadd [#allocation4], 4294967280 }
 0x3af   :  { %1065 = vsyncpa [#allocation3], 1 }
 0x3b0   :  { %1066 = vsyncpa [#allocation6], 1 }
 0x3b1   :  { %1067 = vsyncpa [#allocation9], 1 }
 0x3b2   :  { %1068 = vsyncpa [#allocation4], 1 }

</bundles_post_ra>
